<compile_context>
chip_gen: v6e
topology: v6e:2x2x1
jax: 0.10.0
libtpu: 0.0.40
codegen_flags: <defaults>
</compile_context>

<pallas_src>
import jax
import jax.numpy as jnp
from jax.experimental import pallas as pl
from jax.experimental.pallas import tpu as pltpu


def _se_gate_kernel(w_ref, b_ref, xse_ref, xm_ref, o_ref):
    # w_ref:   [TC, C_in]   channel-tile slice of the 1x1 conv weight
    # b_ref:   [TC, 1]      channel-tile slice of the bias
    # xse_ref: [1, C_in]    squeeze vector for this batch element
    # xm_ref:  [1, TC, HW]  NCHW-resident main activation tile (lanes = HW)
    # o_ref:   [1, TC, HW]
    w = w_ref[...].astype(jnp.float32)               # [TC, C_in]
    xse = xse_ref[...].astype(jnp.float32)           # [1, C_in] (broadcast)
    se = jnp.sum(w * xse, axis=1, keepdims=True)     # [TC, 1]  (lane reduce)
    gate = jax.nn.sigmoid(se + b_ref[...].astype(jnp.float32))   # [TC, 1]
    xm = xm_ref[...].astype(jnp.float32)             # in-vreg upcast
    o_ref[...] = (gate[None] * xm).astype(o_ref.dtype)


def se_conv_sigmoid_mul(x_se_nchw, x_main_nchw, weight, bias, *, tc=240):
    """x_se_nchw: [N, C_in, 1, 1]; x_main_nchw: [N, C_out, H, W];
    weight: [C_out, C_in, 1, 1]; bias: [C_out]. Returns [N, C_out, H, W]."""
    N, C_in = x_se_nchw.shape[0], x_se_nchw.shape[1]
    _, C_out, H, W = x_main_nchw.shape
    HW = H * W
    assert C_out % tc == 0, "channel tile must divide C_out"

    x_se = x_se_nchw.reshape(N, C_in)                 # tiny, free
    x_main = x_main_nchw.reshape(N, C_out, HW)        # free reshape (NCHW contiguous)
    w = weight.reshape(C_out, C_in)
    b = bias.reshape(C_out, 1)

    out = pl.pallas_call(
        _se_gate_kernel,
        out_shape=jax.ShapeDtypeStruct((N, C_out, HW), x_main.dtype),
        grid=(N, C_out // tc),
        in_specs=[
            pl.BlockSpec((tc, C_in), lambda n, c: (c, 0)),       # weight tile
            pl.BlockSpec((tc, 1), lambda n, c: (c, 0)),          # bias tile
            pl.BlockSpec((1, C_in), lambda n, c: (n, 0)),        # squeeze vec
            pl.BlockSpec((1, tc, HW), lambda n, c: (n, c, 0)),   # main act tile
        ],
        out_specs=pl.BlockSpec((1, tc, HW), lambda n, c: (n, c, 0)),
        compiler_params=pltpu.CompilerParams(
            dimension_semantics=("parallel", "parallel")),
    )(w, b, x_se, x_main)

    return out.reshape(N, C_out, H, W)                # free reshape back to NCHW


def _reference(x_se_nchw, x_main_nchw, weight, bias):
    N, C_in = x_se_nchw.shape[0], x_se_nchw.shape[1]
    w = weight.reshape(weight.shape[0], C_in)
    se = x_se_nchw.reshape(N, C_in) @ w.T + bias[None, :]     # [N, C_out]
    gate = jax.nn.sigmoid(se)[:, :, None, None]               # [N, C_out, 1, 1]
    return gate * x_main_nchw


if __name__ == "__main__":
    # Shapes from the module: x408 [1, 40, 1, 1], x405 [1, 960, 14, 14].
    N, C_in, C_out, H, W = 1, 40, 960, 14, 14

    key = jax.random.PRNGKey(0)
    k1, k2, k3, k4 = jax.random.split(key, 4)
    x408 = jax.random.normal(k1, (N, C_in, 1, 1), dtype=jnp.float32)
    x405 = jax.random.normal(k2, (N, C_out, H, W), dtype=jnp.float32)
    # Deterministic synthetic Conv2d(40, 960, 1x1) parameters.
    weight = jax.random.normal(k3, (C_out, C_in, 1, 1), dtype=jnp.float32) * 0.05
    bias = jax.random.normal(k4, (C_out,), dtype=jnp.float32) * 0.05

    out = se_conv_sigmoid_mul(x408, x405, weight, bias)
    out = jax.block_until_ready(out)

    ref = _reference(x408, x405, weight, bias)
    assert out.shape == (N, C_out, H, W)
    assert jnp.allclose(out, ref, atol=1e-5, rtol=1e-5)
    print("KERNEL_OK")
</pallas_src>

<mosaic_0001>
module attributes {stable_mosaic.version = 11 : i64} {
  func.func @_se_gate_kernel(%arg0: i32, %arg1: i32, %arg2: memref<240x40xf32, #tpu.memory_space<vmem>>, %arg3: memref<240x1xf32, #tpu.memory_space<vmem>>, %arg4: memref<1x40xf32, #tpu.memory_space<vmem>>, %arg5: memref<1x240x196xf32, #tpu.memory_space<vmem>>, %arg6: memref<1x240x196xf32, #tpu.memory_space<vmem>>) attributes {dimension_semantics = [#tpu.dimension_semantics<parallel>, #tpu.dimension_semantics<parallel>], iteration_bounds = array<i64: 1, 4>, scalar_prefetch = 0 : i64, scratch_operands = 0 : i64, tpu.core_type = #tpu.core_type<tc>, window_params = [{transform_indices = @transform_0, window_bounds = array<i64: 240, 40>}, {transform_indices = @transform_1, window_bounds = array<i64: 240, 1>}, {transform_indices = @transform_2, window_bounds = array<i64: 1, 40>}, {transform_indices = @transform_3, window_bounds = array<i64: 1, 240, 196>}, {transform_indices = @transform_4, window_bounds = array<i64: 1, 240, 196>}]} {
    %c0 = arith.constant 0 : index
    %c0_0 = arith.constant 0 : index
    %0 = vector.load %arg2[%c0, %c0_0] : memref<240x40xf32, #tpu.memory_space<vmem>>, vector<240x40xf32>
    %c0_1 = arith.constant 0 : index
    %c0_2 = arith.constant 0 : index
    %1 = vector.load %arg4[%c0_1, %c0_2] : memref<1x40xf32, #tpu.memory_space<vmem>>, vector<1x40xf32>
    %2 = vector.broadcast %1 : vector<1x40xf32> to vector<240x40xf32>
    %3 = arith.mulf %0, %2 : vector<240x40xf32>
    %cst = arith.constant dense<0.000000e+00> : vector<240xf32>
    %4 = vector.multi_reduction <add>, %3, %cst [1] : vector<240x40xf32> to vector<240xf32>
    %5 = vector.shape_cast %4 : vector<240xf32> to vector<240x1xf32>
    %c0_3 = arith.constant 0 : index
    %c0_4 = arith.constant 0 : index
    %6 = vector.load %arg3[%c0_3, %c0_4] : memref<240x1xf32, #tpu.memory_space<vmem>>, vector<240x1xf32>
    %7 = arith.addf %5, %6 : vector<240x1xf32>
    %8 = arith.negf %7 : vector<240x1xf32>
    %9 = math.exp %8 : vector<240x1xf32>
    %cst_5 = arith.constant 1.000000e+00 : f32
    %10 = vector.broadcast %cst_5 : f32 to vector<240x1xf32>
    %11 = arith.addf %10, %9 : vector<240x1xf32>
    %12 = arith.divf %10, %11 : vector<240x1xf32>
    %c0_6 = arith.constant 0 : index
    %c0_7 = arith.constant 0 : index
    %c0_8 = arith.constant 0 : index
    %13 = vector.load %arg5[%c0_6, %c0_7, %c0_8] : memref<1x240x196xf32, #tpu.memory_space<vmem>>, vector<1x240x196xf32>
    %14 = vector.shape_cast %12 : vector<240x1xf32> to vector<1x240x1xf32>
    %15 = vector.broadcast %14 : vector<1x240x1xf32> to vector<1x240x196xf32>
    %16 = arith.mulf %15, %13 : vector<1x240x196xf32>
    %c0_9 = arith.constant 0 : index
    %c0_10 = arith.constant 0 : index
    %c0_11 = arith.constant 0 : index
    %17 = vector.load %arg6[%c0_9, %c0_10, %c0_11] : memref<1x240x196xf32, #tpu.memory_space<vmem>>, vector<1x240x196xf32>
    tpu.vector_store %arg6[%c0_9, %c0_10, %c0_11], %16 {strides = array<i32>} : memref<1x240x196xf32, #tpu.memory_space<vmem>>, vector<1x240x196xf32>,
    return
  }
  func.func @transform_0(%arg0: i32, %arg1: i32) -> (i32, i32) {
    %c0_i32 = arith.constant 0 : i32
    %c0_i32_0 = arith.constant 0 : i32
    return %arg1, %c0_i32 : i32, i32
  }
  func.func @transform_1(%arg0: i32, %arg1: i32) -> (i32, i32) {
    %c0_i32 = arith.constant 0 : i32
    %c0_i32_0 = arith.constant 0 : i32
    return %arg1, %c0_i32 : i32, i32
  }
  func.func @transform_2(%arg0: i32, %arg1: i32) -> (i32, i32) {
    %c0_i32 = arith.constant 0 : i32
    %c0_i32_0 = arith.constant 0 : i32
    return %arg0, %c0_i32 : i32, i32
  }
  func.func @transform_3(%arg0: i32, %arg1: i32) -> (i32, i32, i32) {
    %c0_i32 = arith.constant 0 : i32
    %c0_i32_0 = arith.constant 0 : i32
    return %arg0, %arg1, %c0_i32 : i32, i32, i32
  }
  func.func @transform_4(%arg0: i32, %arg1: i32) -> (i32, i32, i32) {
    %c0_i32 = arith.constant 0 : i32
    %c0_i32_0 = arith.constant 0 : i32
    return %arg0, %arg1, %c0_i32 : i32, i32, i32
  }
}

</mosaic_0001>

<bundles_post_ra>
// kernel: tpu_custom_call.1
= control target key start
LH: loop header
LB: loop body
LE: loop exit
PB: predicated region body
PF: predicated region fallthrough
CT: control target
= control target key end

     0   :  { %s1405_s15 = smov 0   ;;  %s1407_s16 = smov 0   ;;  %s1735_s0 = inlined_call_operand.vmem [shape: f32[960,40], index: 0, kind: input, shape index: {}]   ;;  %s1736_s1 = inlined_call_operand.vmem [shape: f32[960,1], index: 1, kind: input, shape index: {}]   ;;  %s1737_s2 = inlined_call_operand.vmem [shape: f32[1,40], index: 2, kind: input, shape index: {}]   ;;  %s1738_s3 = inlined_call_operand.vmem [shape: f32[1,960,196], index: 3, kind: input, shape index: {}]   ;;  %s1739_s4 = inlined_call_operand.vmem [shape: f32[1,960,196], index: 4, kind: output, shape index: {}]  }
   0x1   :  { %s1409_s17 = smov 0  }
   0x2 LB: > { %s23_s18 = sadd.s32 1, %s1373_s16  ;;  %p1166_p0 = scmp.ge.s32.totalorder %s1377_s17, 1  ;;  %s1377_s17 = sphi %s1409_s17, %s14_s17   ;;  %s1373_s16 = sphi %s1407_s16, %s1741_s16   ;;  %s1369_s15 = sphi %s1405_s15, %s1740_s15  }
   0x3   : > { %p24_p1 = scmp.ge.s32.totalorder %s23_s18, 4  ;;  %p214_p2 = scmp.lt.s32.totalorder %s1377_s17, 5 }
   0x5   : > { %s1743_s18 = smov (%p24_p1, %s23_s18), 0  ;;  %p215_p3 = pnand %p1166_p0, %p214_p2 }
   0x6   : > { %s263_s19 = smul.u32 (!%p215_p3), 30, %s1369_s15 }
   0x7   : > { %218 = sbr.rel (%p215_p3) target bundleno = 391 (0x187), region = 36 }
   0x8   : > { %p264_p4 = scmp.lt.s32.totalorder (!%p215_p3), %s263_s19, 119 }
   0xc   : > { %s1745_s19 = smov (!%p264_p4, %s263_s19), 119  ;;  %v1429_v0 = vld [vmem:[%s1737_s2] ss:$0 sm:$0xff]  ;;  %vm367_vm0 = vcmask 326656   ;;  %vm969_vm1 = vcmask 556032  }
   0xd   : > { %s1167_s20 = sshll.u32 %s1745_s19, 3  ;;  %s1206_s29 = sshll.u32 %s1745_s19, 4 }
   0xe   : > { %s1436_s25 = scalar_lea.vmem %s1735_s0, %s1167_s20  ;;  %s1533_s28 = scalar_lea.vmem %s1736_s1, %s1167_s20 }
   0xf   : > { %v302_v1 = vld [vmem:[%s1436_s25 + $0x10] sm:$0xff]  ;;  %v300_v2 = vld [vmem:[%s1436_s25] sm:$0xff]  ;;  %v303_v3 = vld [vmem:[%s1436_s25 + $0x18] sm:$0xff]  ;;  %s1569_s6 = scalar_lea.vmem %s1738_s3, %s1206_s29  ;;  %s1576_s9 = scalar_lea.vmem %s1739_s4, %s1206_s29 }
  0x10   : > { %v339_v4 = vmul.f32 %v1429_v0, %v302_v1  ;;  %v337_v5 = vmul.f32 %v1429_v0, %v300_v2  ;;  %v340_v6 = vmul.f32 %v1429_v0, %v303_v3  ;;  %v301_v7 = vld [vmem:[%s1436_s25 + $0x8] sm:$0xff]  ;;  %v304_v10 = vld [vmem:[%s1436_s25 + $0x20] sm:$0xff]  ;;  %v307_v17 = vld [vmem:[%s1436_s25 + $0x38] sm:$0xff] }
  0x11   : > { %v338_v8 = vmul.f32 %v1429_v0, %v301_v7  ;;  %v305_v9 = vld [vmem:[%s1436_s25 + $0x28] sm:$0xff]  ;;  %v341_v16 = vmul.f32 %v1429_v0, %v304_v10  ;;  %v306_v18 = vld [vmem:[%s1436_s25 + $0x30] sm:$0xff]  ;;  %v344_v20 = vmul.f32 %v1429_v0, %v307_v17  ;;  %v308_v24 = vld [vmem:[%s1436_s25 + $0x40] sm:$0xff] }
  0x12   : > { %v374_v11 = vsel %vm367_vm0, %v339_v4, 0.0  ;;  %v368_v12 = vsel %vm367_vm0, %v337_v5, 0.0  ;;  %v377_v13 = vsel %vm367_vm0, %v340_v6, 0.0  ;;  %v342_v15 = vmul.f32 %v1429_v0, %v305_v9  ;;  %v309_v23 = vld [vmem:[%s1436_s25 + $0x48] sm:$0xff]  ;;  %v311_v29 = vld [vmem:[%s1436_s25 + $0x58] sm:$0xff]  ;;  %v310_v30 = vld [vmem:[%s1436_s25 + $0x50] sm:$0xff] }
  0x13   : > { %375 = vadd.xlane.f32.xlu1 %v374_v11  ;;  %369 = vadd.xlane.f32.xlu0 %v368_v12  ;;  %v371_v14 = vsel %vm367_vm0, %v338_v8, 0.0  ;;  %v380_v21 = vsel %vm367_vm0, %v341_v16, 0.0  ;;  %v343_v22 = vmul.f32 %v1429_v0, %v306_v18  ;;  %v389_v25 = vsel %vm367_vm0, %v344_v20, 0.0  ;;  %v313_v35 = vld [vmem:[%s1436_s25 + $0x68] sm:$0xff]  ;;  %v312_v36 = vld [vmem:[%s1436_s25 + $0x60] sm:$0xff]  ;;  %v315_v41 = vld [vmem:[%s1436_s25 + $0x78] sm:$0xff] }
  0x14   : > { %v383_v19 = vsel %vm367_vm0, %v342_v15, 0.0  ;;  %v346_v26 = vmul.f32 %v1429_v0, %v309_v23  ;;  %v345_v28 = vmul.f32 %v1429_v0, %v308_v24  ;;  %v348_v32 = vmul.f32 %v1429_v0, %v311_v29  ;;  %v314_v42 = vld [vmem:[%s1436_s25 + $0x70] sm:$0xff]  ;;  %v317_v47 = vld [vmem:[%s1436_s25 + $0x88] sm:$0xff]  ;;  %v316_v48 = vld [vmem:[%s1436_s25 + $0x80] sm:$0xff] }
  0x15   : > { %v386_v27 = vsel %vm367_vm0, %v343_v22, 0.0  ;;  %v347_v34 = vmul.f32 %v1429_v0, %v310_v30  ;;  %v350_v38 = vmul.f32 %v1429_v0, %v313_v35  ;;  %v349_v40 = vmul.f32 %v1429_v0, %v312_v36  ;;  %v319_v53 = vld [vmem:[%s1436_s25 + $0x98] sm:$0xff]  ;;  %v318_v54 = vld [vmem:[%s1436_s25 + $0x90] sm:$0xff]  ;;  %v321_v59 = vld [vmem:[%s1436_s25 + $0xa8] sm:$0xff] }
  0x16   : > { %v395_v31 = vsel %vm367_vm0, %v346_v26, 0.0  ;;  %v392_v33 = vsel %vm367_vm0, %v345_v28, 0.0  ;;  %v401_v37 = vsel %vm367_vm0, %v348_v32, 0.0  ;;  %v352_v44 = vmul.f32 %v1429_v0, %v315_v41  ;;  %v320_v60 = vld [vmem:[%s1436_s25 + $0xa0] sm:$0xff]  ;;  %v323_v2 = vld [vmem:[%s1436_s25 + $0xb8] sm:$0xff]  ;;  %v322_v3 = vld [vmem:[%s1436_s25 + $0xb0] sm:$0xff] }
  0x17   : > { %378 = vadd.xlane.f32.xlu1 %v377_v13  ;;  %372 = vadd.xlane.f32.xlu0 %v371_v14  ;;  %v398_v39 = vsel %vm367_vm0, %v347_v34, 0.0  ;;  %v407_v43 = vsel %vm367_vm0, %v350_v38, 0.0  ;;  %v404_v45 = vsel %vm367_vm0, %v349_v40, 0.0  ;;  %v351_v46 = vmul.f32 %v1429_v0, %v314_v42  ;;  %v325_v8 = vld [vmem:[%s1436_s25 + $0xc8] sm:$0xff]  ;;  %v324_v9 = vld [vmem:[%s1436_s25 + $0xc0] sm:$0xff]  ;;  %v327_v14 = vld [vmem:[%s1436_s25 + $0xd8] sm:$0xff] }
  0x18   : > { %v413_v49 = vsel %vm367_vm0, %v352_v44, 0.0  ;;  %v354_v50 = vmul.f32 %v1429_v0, %v317_v47  ;;  %v353_v52 = vmul.f32 %v1429_v0, %v316_v48  ;;  %v356_v56 = vmul.f32 %v1429_v0, %v319_v53  ;;  %v326_v15 = vld [vmem:[%s1436_s25 + $0xd0] sm:$0xff]  ;;  %v328_v22 = vld [vmem:[%s1436_s25 + $0xe0] sm:$0xff]  ;;  %v461_v34 = vld [vmem:[%s1533_s28 + $0x18] sm:$0xff] }
  0x19   : > { %v410_v51 = vsel %vm367_vm0, %v351_v46, 0.0  ;;  %v355_v58 = vmul.f32 %v1429_v0, %v318_v54  ;;  %v358_v62 = vmul.f32 %v1429_v0, %v321_v59  ;;  %v357_v1 = vmul.f32 %v1429_v0, %v320_v60  ;;  %v458_v29 = vld [vmem:[%s1533_s28] sm:$0xff]  ;;  %v459_v35 = vld [vmem:[%s1533_s28 + $0x8] sm:$0xff]  ;;  %v464_v53 = vld [vmem:[%s1533_s28 + $0x30] sm:$0xff] }
  0x1a   : > { %v419_v55 = vsel %vm367_vm0, %v354_v50, 0.0  ;;  %v416_v57 = vsel %vm367_vm0, %v353_v52, 0.0  ;;  %v425_v61 = vsel %vm367_vm0, %v356_v56, 0.0  ;;  %v360_v5 = vmul.f32 %v1429_v0, %v323_v2  ;;  %v462_v42 = vld [vmem:[%s1533_s28 + $0x20] sm:$0xff]  ;;  %v463_v47 = vld [vmem:[%s1533_s28 + $0x28] sm:$0xff]  ;;  %v465_v54 = vld [vmem:[%s1533_s28 + $0x38] sm:$0xff] }
  0x1b   : > { %384 = vadd.xlane.f32.xlu1 %v383_v19  ;;  %381 = vadd.xlane.f32.xlu0 %v380_v21  ;;  %v422_v63 = vsel %vm367_vm0, %v355_v58, 0.0  ;;  %v431_v4 = vsel %vm367_vm0, %v358_v62, 0.0  ;;  %v428_v6 = vsel %vm367_vm0, %v357_v1, 0.0  ;;  %v359_v7 = vmul.f32 %v1429_v0, %v322_v3  ;;  %v329_v21 = vld [vmem:[%s1436_s25 + $0xe8] sm:$0xff]  ;;  %v469_v62 = vld [vmem:[%s1533_s28 + $0x58] sm:$0xff]  ;;  %v466_v2 = vld [vmem:[%s1533_s28 + $0x40] sm:$0xff] }
  0x1c   : > { %v437_v10 = vsel %vm367_vm0, %v360_v5, 0.0  ;;  %v362_v11 = vmul.f32 %v1429_v0, %v325_v8  ;;  %v361_v13 = vmul.f32 %v1429_v0, %v324_v9  ;;  %v364_v17 = vmul.f32 %v1429_v0, %v327_v14  ;;  %v468_v14 = vld [vmem:[%s1533_s28 + $0x50] sm:$0xff] }
  0x1d   : > { %v434_v12 = vsel %vm367_vm0, %v359_v7, 0.0  ;;  %v363_v19 = vmul.f32 %v1429_v0, %v326_v15  ;;  %v1379_v20 = vmov 0   ;;  %v366_v24 = vmul.f32 %v1429_v0, %v329_v21  ;;  %v473_v21 = vld [vmem:[%s1533_s28 + $0x78] sm:$0xff] }
  0x1e   : > { %v443_v16 = vsel %vm367_vm0, %v362_v11, 0.0  ;;  %v440_v18 = vsel %vm367_vm0, %v361_v13, 0.0  ;;  %1233 = vset.pattern.permute.xlu0 %v1379_v20  ;;  %1234 = vset.pattern.permute.xlu1 %v1379_v20  ;;  %v449_v23 = vsel %vm367_vm0, %v364_v17, 0.0  ;;  %v365_v26 = vmul.f32 %v1429_v0, %v328_v22  ;;  %v460_v0 = vld [vmem:[%s1533_s28 + $0x10] sm:$0xff] }
  0x1f   : > { %390 = vadd.xlane.f32.xlu1 %v389_v25  ;;  %387 = vadd.xlane.f32.xlu0 %v386_v27  ;;  %v446_v25 = vsel %vm367_vm0, %v363_v19, 0.0  ;;  %v455_v27 = vsel %vm367_vm0, %v366_v24, 0.0 }
  0x20   : > { %v452_v28 = vsel %vm367_vm0, %v365_v26, 0.0 }
  0x23   : > { %396 = vadd.xlane.f32.xlu1 %v395_v31  ;;  %393 = vadd.xlane.f32.xlu0 %v392_v33 }
  0x27   : > { %402 = vadd.xlane.f32.xlu1 %v401_v37  ;;  %399 = vadd.xlane.f32.xlu0 %v398_v39 }
  0x2b   : > { %408 = vadd.xlane.f32.xlu1 %v407_v43  ;;  %405 = vadd.xlane.f32.xlu0 %v404_v45 }
  0x2f   : > { %414 = vadd.xlane.f32.xlu1 %v413_v49  ;;  %411 = vadd.xlane.f32.xlu0 %v410_v51 }
  0x33   : > { %420 = vadd.xlane.f32.xlu1 %v419_v55  ;;  %417 = vadd.xlane.f32.xlu0 %v416_v57  ;;  %v467_v55 = vld [vmem:[%s1533_s28 + $0x48] sm:$0xff] }
  0x37   : > { %426 = vadd.xlane.f32.xlu1 %v425_v61  ;;  %423 = vadd.xlane.f32.xlu0 %v422_v63 }
  0x3b   : > { %432 = vadd.xlane.f32.xlu1 %v431_v4  ;;  %429 = vadd.xlane.f32.xlu0 %v428_v6 }
  0x3f   : > { %438 = vadd.xlane.f32.xlu1 %v437_v10  ;;  %435 = vadd.xlane.f32.xlu0 %v434_v12  ;;  %v471_v10 = vld [vmem:[%s1533_s28 + $0x68] sm:$0xff] }
  0x43   : > { %444 = vadd.xlane.f32.xlu1 %v443_v16  ;;  %441 = vadd.xlane.f32.xlu0 %v440_v18 }
  0x47   : > { %450 = vadd.xlane.f32.xlu1 %v449_v23  ;;  %447 = vadd.xlane.f32.xlu0 %v446_v25  ;;  %v470_v25 = vld [vmem:[%s1533_s28 + $0x60] sm:$0xff] }
  0x4b   : > { %456 = vadd.xlane.f32.xlu1 %v455_v27  ;;  %453 = vadd.xlane.f32.xlu0 %v452_v28 }
  0x9c   : > { %v376_v30 = vpop.xlane.xlu1 %375  ;;  %v370_v31 = vpop.xlane.xlu0 %369 }
  0x9d   : > { %v490_v32 = vadd.f32 %v460_v0, %v376_v30  ;;  %v488_v33 = vadd.f32 %v458_v29, %v370_v31  ;;  %v475_v30 = vld [vmem:[%s1533_s28 + $0x88] sm:$0xff] }
  0x9f   : > { %v1174_v36 = vmul.f32 -1.442695, %v488_v33  ;;  %v1176_v37 = vmul.f32 -1.442695, %v490_v32 }
  0xa0   : > { %v379_v38 = vpop.xlane.xlu1 %378  ;;  %v373_v39 = vpop.xlane.xlu0 %372 }
  0xa1   : > { %v491_v40 = vadd.f32 %v461_v34, %v379_v38  ;;  %v489_v41 = vadd.f32 %v459_v35, %v373_v39  ;;  %1235 = vpow2.f32 %v1174_v36  ;;  %v472_v34 = vld [vmem:[%s1533_s28 + $0x70] sm:$0xff] }
  0xa2   : > { %1237 = vpow2.f32 %v1176_v37 }
  0xa3   : > { %v1175_v43 = vmul.f32 -1.442695, %v489_v41  ;;  %v1177_v44 = vmul.f32 -1.442695, %v491_v40  ;;  %v477_v40 = vld [vmem:[%s1533_s28 + $0x98] sm:$0xff] }
  0xa4   : > { %v385_v45 = vpop.xlane.xlu1 %384  ;;  %v382_v46 = vpop.xlane.xlu0 %381 }
  0xa5   : > { %v492_v48 = vadd.f32 %v462_v42, %v382_v46  ;;  %1239 = vpow2.f32 %v1175_v43  ;;  %v493_v49 = vadd.f32 %v463_v47, %v385_v45  ;;  %v474_v45 = vld [vmem:[%s1533_s28 + $0x80] sm:$0xff] }
  0xa6   : > { %1241 = vpow2.f32 %v1177_v44 }
  0xa7   : > { %v1178_v51 = vmul.f32 -1.442695, %v492_v48  ;;  %v1179_v56 = vmul.f32 -1.442695, %v493_v49 }
  0xa8   : > { %v391_v50 = vpop.xlane.xlu1 %390  ;;  %v388_v52 = vpop.xlane.xlu0 %387 }
  0xa9   : > { %1243 = vpow2.f32 %v1178_v51  ;;  %v494_v58 = vadd.f32 %v464_v53, %v388_v52  ;;  %v495_v60 = vadd.f32 %v465_v54, %v391_v50  ;;  %v479_v54 = vld [vmem:[%s1533_s28 + $0xa8] sm:$0xff] }
  0xaa   : > { %1245 = vpow2.f32 %v1179_v56 }
  0xab   : > { %v1180_v5 = vmul.f32 -1.442695, %v494_v58  ;;  %v1181_v8 = vmul.f32 -1.442695, %v495_v60 }
  0xac   : > { %v397_v57 = vpop.xlane.xlu1 %396  ;;  %v394_v59 = vpop.xlane.xlu0 %393 }
  0xad   : > { %v497_v61 = vadd.f32 %v467_v55, %v397_v57  ;;  %v496_v11 = vadd.f32 %v466_v2, %v394_v59  ;;  %v476_v59 = vld [vmem:[%s1533_s28 + $0x90] sm:$0xff] }
  0xae   : > { %v1236_v63 = vpop.eup %1235 }
  0xaf   : > { %v1183_v1 = vmul.f32 -1.442695, %v497_v61  ;;  %v608_v3 = vadd.f32 1.0, %v1236_v63  ;;  %v1238_v7 = vpop.eup %1237  ;;  %v1182_v22 = vmul.f32 -1.442695, %v496_v11 }
  0xb0   : > { %v403_v4 = vpop.xlane.xlu1 %402  ;;  %v400_v6 = vpop.xlane.xlu0 %399  ;;  %v610_v15 = vadd.f32 1.0, %v1238_v7 }
  0xb1   : > { %v499_v9 = vadd.f32 %v469_v62, %v403_v4  ;;  %1247 = vrcp.f32 %v608_v3  ;;  %v498_v23 = vadd.f32 %v468_v14, %v400_v6  ;;  %v481_v4 = vld [vmem:[%s1533_s28 + $0xb8] sm:$0xff] }
  0xb2   : > { %v1240_v12 = vpop.eup %1239  ;;  %1249 = vpow2.f32 %v1183_v1 }
  0xb3   : > { %v1185_v13 = vmul.f32 -1.442695, %v499_v9  ;;  %v609_v16 = vadd.f32 1.0, %v1240_v12  ;;  %1251 = vpow2.f32 %v1180_v5  ;;  %v1242_v19 = vpop.eup %1241  ;;  %v1184_v31 = vmul.f32 -1.442695, %v498_v23 }
  0xb4   : > { %v409_v17 = vpop.xlane.xlu1 %408  ;;  %v406_v18 = vpop.xlane.xlu0 %405  ;;  %1253 = vpow2.f32 %v1181_v8  ;;  %v611_v26 = vadd.f32 1.0, %v1242_v19 }
  0xb5   : > { %v501_v20 = vadd.f32 %v471_v10, %v409_v17  ;;  %1255 = vrcp.f32 %v609_v16  ;;  %v500_v32 = vadd.f32 %v470_v25, %v406_v18  ;;  %v478_v16 = vld [vmem:[%s1533_s28 + $0xa0] sm:$0xff]  ;;  %v483_v17 = vld [vmem:[%s1533_s28 + $0xc8] sm:$0xff] }
  0xb6   : > { %1257 = vpow2.f32 %v1185_v13  ;;  %v1244_v0 = vpop.eup %1243 }
  0xb7   : > { %v1187_v24 = vmul.f32 -1.442695, %v501_v20  ;;  %1259 = vrcp.f32 %v610_v15  ;;  %v612_v35 = vadd.f32 1.0, %v1244_v0  ;;  %v1246_v38 = vpop.eup %1245  ;;  %v1186_v41 = vmul.f32 -1.442695, %v500_v32 }
  0xb8   : > { %v415_v27 = vpop.xlane.xlu1 %414  ;;  %v412_v28 = vpop.xlane.xlu0 %411  ;;  %1261 = vpow2.f32 %v1182_v22  ;;  %v613_v47 = vadd.f32 1.0, %v1246_v38 }
  0xb9   : > { %v503_v29 = vadd.f32 %v473_v21, %v415_v27  ;;  %1263 = vpow2.f32 %v1187_v24  ;;  %v502_v42 = vadd.f32 %v472_v34, %v412_v28  ;;  %v480_v28 = vld [vmem:[%s1533_s28 + $0xb0] sm:$0xff] }
  0xba   : > { %1265 = vrcp.f32 %v611_v26 }
  0xbb   : > { %v1189_v33 = vmul.f32 -1.442695, %v503_v29  ;;  %1267 = vpow2.f32 %v1184_v31  ;;  %v1188_v55 = vmul.f32 -1.442695, %v502_v42 }
  0xbc   : > { %v421_v36 = vpop.xlane.xlu1 %420  ;;  %v418_v37 = vpop.xlane.xlu0 %417 }
  0xbd   : > { %v505_v39 = vadd.f32 %v475_v30, %v421_v36  ;;  %1269 = vpow2.f32 %v1189_v33  ;;  %v504_v56 = vadd.f32 %v474_v45, %v418_v37  ;;  %v485_v30 = vld [vmem:[%s1533_s28 + $0xd8] sm:$0xff] }
  0xbe   : > { %v1248_v43 = vpop.eup %1247  ;;  %1271 = vrcp.f32 %v612_v35 }
  0xbf   : > { %v1191_v44 = vmul.f32 -1.442695, %v505_v39  ;;  %v1250_v46 = vpop.eup %1249  ;;  %760 = vperm.xlu0 %1233, %v1248_v43   ;;  %v1190_v5 = vmul.f32 -1.442695, %v504_v56  ;;  %v487_v43 = vld [vmem:[%s1533_s28 + $0xe8] sm:$0xff] }
  0xc0   : > { %v427_v48 = vpop.xlane.xlu1 %426  ;;  %v424_v49 = vpop.xlane.xlu0 %423  ;;  %v617_v51 = vadd.f32 1.0, %v1250_v46 }
  0xc1   : > { %v1252_v50 = vpop.eup %1251  ;;  %1273 = vpow2.f32 %v1191_v44  ;;  %v507_v52 = vadd.f32 %v477_v40, %v427_v48  ;;  %v506_v6 = vadd.f32 %v476_v59, %v424_v49 }
  0xc2   : > { %v1254_v53 = vpop.eup %1253  ;;  %1275 = vpow2.f32 %v1186_v41  ;;  %v614_v61 = vadd.f32 1.0, %v1252_v50  ;;  %v482_v41 = vld [vmem:[%s1533_s28 + $0xc0] sm:$0xff] }
  0xc3   : > { %v1256_v57 = vpop.eup %1255  ;;  %1277 = vrcp.f32 %v617_v51  ;;  %v1193_v58 = vmul.f32 -1.442695, %v507_v52  ;;  %v615_v10 = vadd.f32 1.0, %v1254_v53  ;;  %v1192_v18 = vmul.f32 -1.442695, %v506_v6 }
  0xc4   : > { %v1258_v60 = vpop.eup %1257  ;;  %1279 = vrcp.f32 %v613_v47  ;;  %765 = vperm.xlu1 %1234, %v1256_v57   ;;  %v433_v62 = vpop.xlane.xlu1 %432 }
  0xc5   : > { %v430_v63 = vpop.xlane.xlu0 %429  ;;  %v1260_v1 = vpop.eup %1259  ;;  %v619_v2 = vadd.f32 1.0, %v1258_v60  ;;  %1281 = vpow2.f32 %v1193_v58  ;;  %v509_v3 = vadd.f32 %v479_v54, %v433_v62 }
  0xc6   : > { %1283 = vpow2.f32 %v1188_v55  ;;  %v1262_v7 = vpop.eup %1261  ;;  %v508_v24 = vadd.f32 %v478_v16, %v430_v63  ;;  %v484_v55 = vld [vmem:[%s1533_s28 + $0xd0] sm:$0xff] }
  0xc7   : > { %1285 = vrcp.f32 %v619_v2  ;;  %v1195_v8 = vmul.f32 -1.442695, %v509_v3  ;;  %v1264_v9 = vpop.eup %1263  ;;  %v616_v22 = vadd.f32 1.0, %v1262_v7  ;;  %v486_v2 = vld [vmem:[%s1533_s28 + $0xe0] sm:$0xff] }
  0xc8   : > { %1287 = vrcp.f32 %v614_v61  ;;  %770 = vperm.xlu1 %1234, %v1260_v1   ;;  %v439_v11 = vpop.xlane.xlu1 %438  ;;  %v1266_v13 = vpop.eup %1265  ;;  %v621_v14 = vadd.f32 1.0, %v1264_v9  ;;  %v1194_v37 = vmul.f32 -1.442695, %v508_v24 }
  0xc9   : > { %v436_v12 = vpop.xlane.xlu0 %435  ;;  %1289 = vpow2.f32 %v1195_v8  ;;  %v511_v15 = vadd.f32 %v481_v4, %v439_v11  ;;  %v1268_v19 = vpop.eup %1267 }
  0xca   : > { %1291 = vpow2.f32 %v1190_v5  ;;  %v1270_v21 = vpop.eup %1269  ;;  %v618_v33 = vadd.f32 1.0, %v1268_v19  ;;  %v510_v38 = vadd.f32 %v480_v28, %v436_v12 }
  0xcb   : > { %1293 = vrcp.f32 %v621_v14  ;;  %v1197_v20 = vmul.f32 -1.442695, %v511_v15  ;;  %v1272_v25 = vpop.eup %1271  ;;  %v623_v26 = vadd.f32 1.0, %v1270_v21 }
  0xcc   : > { %1295 = vrcp.f32 %v615_v10  ;;  %775 = vperm.xlu1 %1234, %v1266_v13   ;;  %v445_v23 = vpop.xlane.xlu1 %444  ;;  %v1196_v51 = vmul.f32 -1.442695, %v510_v38 }
  0xcd   : > { %1297 = vpow2.f32 %v1197_v20  ;;  %v513_v27 = vadd.f32 %v483_v17, %v445_v23  ;;  %v442_v0 = vpop.xlane.xlu0 %441 }
  0xce   : > { %v1274_v29 = vpop.eup %1273  ;;  %1299 = vpow2.f32 %v1192_v18  ;;  %v512_v52 = vadd.f32 %v482_v41, %v442_v0 }
  0xcf   : > { %v1276_v31 = vpop.eup %1275  ;;  %1301 = vrcp.f32 %v623_v26  ;;  %v625_v32 = vadd.f32 1.0, %v1274_v29  ;;  %v1199_v34 = vmul.f32 -1.442695, %v513_v27 }
  0xd0   : > { %v1278_v35 = vpop.eup %1277  ;;  %1303 = vrcp.f32 %v616_v22  ;;  %780 = vperm.xlu1 %1234, %v1272_v25   ;;  %v451_v36 = vpop.xlane.xlu1 %450  ;;  %v620_v46 = vadd.f32 1.0, %v1276_v31  ;;  %v1198_v62 = vmul.f32 -1.442695, %v512_v52  ;;  %v701_v52 = vld [vmem:[%s1569_s6 + $0x18] sm:$0xff] }
  0xd1   : > { %v1280_v39 = vpop.eup %1279  ;;  %1305 = vrcp.f32 %v625_v32  ;;  %805 = vperm.xlu0 %1233, %v1278_v35   ;;  %v515_v40 = vadd.f32 %v485_v30, %v451_v36  ;;  %v448_v48 = vpop.xlane.xlu0 %447 }
  0xd2   : > { %v1282_v42 = vpop.eup %1281  ;;  %1307 = vpow2.f32 %v1199_v34  ;;  %v514_v63 = vadd.f32 %v484_v55, %v448_v48 }
  0xd3   : > { %v1284_v44 = vpop.eup %1283  ;;  %v627_v45 = vadd.f32 1.0, %v1282_v42  ;;  %1309 = vrcp.f32 %v618_v33  ;;  %v1201_v47 = vmul.f32 -1.442695, %v515_v40 }
  0xd4   : > { %v1286_v49 = vpop.eup %1285  ;;  %785 = vperm.xlu1 %1234, %v1280_v39   ;;  %v457_v50 = vpop.xlane.xlu1 %456  ;;  %1311 = vpow2.f32 %v1194_v37  ;;  %v622_v59 = vadd.f32 1.0, %v1284_v44  ;;  %v1200_v9 = vmul.f32 -1.442695, %v514_v63 }
  0xd5   : > { %v1288_v53 = vpop.eup %1287  ;;  %1313 = vrcp.f32 %v627_v45  ;;  %815 = vperm.xlu0 %1233, %v1286_v49   ;;  %v517_v54 = vadd.f32 %v487_v43, %v457_v50  ;;  %v454_v3 = vpop.xlane.xlu0 %453 }
  0xd6   : > { %v1290_v56 = vpop.eup %1289  ;;  %1315 = vpow2.f32 %v1201_v47  ;;  %v516_v10 = vadd.f32 %v486_v2, %v454_v3  ;;  %v699_v47 = vld [vmem:[%s1569_s6 + $0x8] sm:$0xff]  ;;  %v706_v3 = vld [vmem:[%s1569_s6 + $0x40] sm:$0xff] }
  0xd7   : > { %v1292_v57 = vpop.eup %1291  ;;  %v629_v58 = vadd.f32 1.0, %v1290_v56  ;;  %1317 = vrcp.f32 %v620_v46  ;;  %v1203_v60 = vmul.f32 -1.442695, %v517_v54  ;;  %v698_v46 = vld [vmem:[%s1569_s6] sm:$0xff] }
  0xd8   : > { %v1294_v61 = vpop.eup %1293  ;;  %790 = vperm.xlu1 %1234, %v1288_v53   ;;  %1319 = vpow2.f32 %v1196_v51  ;;  %v624_v7 = vadd.f32 1.0, %v1292_v57  ;;  %v1202_v17 = vmul.f32 -1.442695, %v516_v10  ;;  %v700_v51 = vld [vmem:[%s1569_s6 + $0x10] sm:$0xff]  ;;  %v702_v56 = vld [vmem:[%s1569_s6 + $0x20] sm:$0xff]  ;;  %v703_v57 = vld [vmem:[%s1569_s6 + $0x28] sm:$0xff] }
  0xd9   : > { %v1296_v1 = vpop.eup %1295  ;;  %1321 = vrcp.f32 %v629_v58  ;;  %825 = vperm.xlu0 %1233, %v1294_v61   ;;  %v704_v61 = vld [vmem:[%s1569_s6 + $0x30] sm:$0xff] }
  0xda   : > { %v1298_v4 = vpop.eup %1297  ;;  %1323 = vpow2.f32 %v1203_v60 }
  0xdb   : > { %v1300_v5 = vpop.eup %1299  ;;  %v631_v6 = vadd.f32 1.0, %v1298_v4  ;;  %1325 = vrcp.f32 %v622_v59  ;;  %v707_v4 = vld [vmem:[%s1569_s6 + $0x48] sm:$0xff] }
  0xdc   : > { %v1302_v8 = vpop.eup %1301  ;;  %795 = vperm.xlu1 %1234, %v1296_v1   ;;  %1327 = vpow2.f32 %v1198_v62  ;;  %v626_v14 = vadd.f32 1.0, %v1300_v5  ;;  %v705_v62 = vld [vmem:[%s1569_s6 + $0x38] sm:$0xff]  ;;  %v716_v5 = vld [vmem:[%s1569_s6 + $0x90] sm:$0xff] }
  0xdd   : > { %v1304_v11 = vpop.eup %1303  ;;  %1329 = vrcp.f32 %v631_v6  ;;  %835 = vperm.xlu0 %1233, %v1302_v8   ;;  %v717_v6 = vld [vmem:[%s1569_s6 + $0x98] sm:$0xff] }
  0xde   : > { %v1306_v12 = vpop.eup %1305  ;;  %1331 = vrcp.f32 %v624_v7 }
  0xdf   : > { %v1308_v13 = vpop.eup %1307  ;;  %1333 = vpow2.f32 %v1200_v9 }
  0xe0   : > { %v1310_v15 = vpop.eup %1309  ;;  %v633_v16 = vadd.f32 1.0, %v1308_v13  ;;  %800 = vperm.xlu1 %1234, %v1304_v11   ;;  %v708_v13 = vld [vmem:[%s1569_s6 + $0x50] sm:$0xff] }
  0xe1   : > { %v1312_v18 = vpop.eup %1311  ;;  %845 = vperm.xlu0 %1233, %v1306_v12  }
  0xe2   : > { %v1314_v19 = vpop.eup %1313  ;;  %1335 = vrcp.f32 %v633_v16  ;;  %v628_v23 = vadd.f32 1.0, %v1312_v18  ;;  %v721_v16 = vld [vmem:[%s1569_s6 + $0xb8] sm:$0xff] }
  0xe3   : > { %v1316_v20 = vpop.eup %1315  ;;  %1337 = vrcp.f32 %v626_v14  ;;  %v709_v14 = vld [vmem:[%s1569_s6 + $0x58] sm:$0xff] }
  0xe4   : > { %v1318_v21 = vpop.eup %1317  ;;  %v635_v22 = vadd.f32 1.0, %v1316_v20  ;;  %810 = vperm.xlu1 %1234, %v1310_v15   ;;  %1339 = vpow2.f32 %v1202_v17  ;;  %v720_v15 = vld [vmem:[%s1569_s6 + $0xb0] sm:$0xff] }
  0xe5   : > { %v1320_v24 = vpop.eup %1319  ;;  %855 = vperm.xlu0 %1233, %v1314_v19  }
  0xe6   : > { %v1322_v25 = vpop.eup %1321  ;;  %1341 = vrcp.f32 %v635_v22  ;;  %v630_v0 = vadd.f32 1.0, %v1320_v24  ;;  %v711_v24 = vld [vmem:[%s1569_s6 + $0x68] sm:$0xff] }
  0xe7   : > { %v1324_v26 = vpop.eup %1323  ;;  %1343 = vrcp.f32 %v628_v23  ;;  %v710_v23 = vld [vmem:[%s1569_s6 + $0x60] sm:$0xff] }
  0xe8   : > { %v1326_v27 = vpop.eup %1325  ;;  %v637_v28 = vadd.f32 1.0, %v1324_v26  ;;  %820 = vperm.xlu1 %1234, %v1318_v21   ;;  %v725_v26 = vld [vmem:[%s1569_s6 + $0xd8] sm:$0xff] }
  0xe9   : > { %v1328_v29 = vpop.eup %1327  ;;  %865 = vperm.xlu0 %1233, %v1322_v25   ;;  %v724_v25 = vld [vmem:[%s1569_s6 + $0xd0] sm:$0xff] }
  0xea   : > { %v1330_v30 = vpop.eup %1329  ;;  %1345 = vrcp.f32 %v637_v28  ;;  %v632_v32 = vadd.f32 1.0, %v1328_v29 }
  0xeb   : > { %v1332_v31 = vpop.eup %1331  ;;  %1347 = vrcp.f32 %v630_v0 }
  0xec   : > { %830 = vperm.xlu1 %1234, %v1326_v27   ;;  %v1334_v33 = vpop.eup %1333  ;;  %1349 = vrcp.f32 %v632_v32  ;;  %v712_v32 = vld [vmem:[%s1569_s6 + $0x70] sm:$0xff] }
  0xed   : > { %875 = vperm.xlu0 %1233, %v1330_v30   ;;  %v634_v36 = vadd.f32 1.0, %v1334_v33  ;;  %v713_v33 = vld [vmem:[%s1569_s6 + $0x78] sm:$0xff] }
  0xef   : > { %v1336_v34 = vpop.eup %1335  ;;  %1351 = vrcp.f32 %v634_v36 }
  0xf0   : > { %v1338_v35 = vpop.eup %1337  ;;  %840 = vperm.xlu1 %1234, %v1332_v31  }
  0xf1   : > { %v1340_v37 = vpop.eup %1339  ;;  %885 = vperm.xlu0 %1233, %v1336_v34   ;;  %v728_v34 = vld [vmem:[%s1569_s6 + $0xf0] sm:$0xff] }
  0xf2   : > { %v636_v39 = vadd.f32 1.0, %v1340_v37 }
  0xf3   : > { %v1342_v38 = vpop.eup %1341 }
  0xf4   : > { %850 = vperm.xlu1 %1234, %v1338_v35   ;;  %v1344_v40 = vpop.eup %1343  ;;  %1353 = vrcp.f32 %v636_v39  ;;  %v729_v35 = vld [vmem:[%s1569_s6 + $0xf8] sm:$0xff] }
  0xf5   : > { %895 = vperm.xlu0 %1233, %v1342_v38  }
  0xf7   : > { %v1346_v41 = vpop.eup %1345 }
  0xf8   : > { %860 = vperm.xlu1 %1234, %v1344_v40   ;;  %v1348_v42 = vpop.eup %1347 }
  0xf9   : > { %905 = vperm.xlu0 %1233, %v1346_v41   ;;  %v1350_v43 = vpop.eup %1349 }
  0xfc   : > { %870 = vperm.xlu1 %1234, %v1348_v42   ;;  %v1352_v44 = vpop.eup %1351  ;;  %v714_v42 = vld [vmem:[%s1569_s6 + $0x80] sm:$0xff] }
 0x100   : > { %880 = vperm.xlu1 %1234, %v1350_v43   ;;  %v715_v43 = vld [vmem:[%s1569_s6 + $0x88] sm:$0xff] }
 0x101   : > { %v1354_v45 = vpop.eup %1353 }
 0x104   : > { %890 = vperm.xlu1 %1234, %v1352_v44   ;;  %v732_v44 = vld [vmem:[%s1569_s6 + $0x110] sm:$0xff] }
 0x108   : > { %900 = vperm.xlu1 %1234, %v1354_v45   ;;  %v733_v45 = vld [vmem:[%s1569_s6 + $0x118] sm:$0xff] }
 0x13a   : > { %v761_v48 = vpop.permute.xlu0 %760 }
 0x13b   : > { %v908_v49 = vmul.f32 %v761_v48, %v698_v46  ;;  %v909_v50 = vmul.f32 %v761_v48, %v699_v47 }
 0x13d   : > { %968 = vst [vmem:[%s1576_s9] sm:$0xff] %v908_v49  ;;  %970 = vst.msk [vmem:[%s1576_s9 + $0x8] sm:$0xff] %vm969_vm1, %v909_v50 }
 0x13f   : > { %v766_v53 = vpop.permute.xlu1 %765 }
 0x140   : > { %v910_v54 = vmul.f32 %v766_v53, %v700_v51  ;;  %v911_v55 = vmul.f32 %v766_v53, %v701_v52  ;;  %v718_v52 = vld [vmem:[%s1569_s6 + $0xa0] sm:$0xff]  ;;  %v719_v53 = vld [vmem:[%s1569_s6 + $0xa8] sm:$0xff] }
 0x142   : > { %971 = vst [vmem:[%s1576_s9 + $0x10] sm:$0xff] %v910_v54  ;;  %972 = vst.msk [vmem:[%s1576_s9 + $0x18] sm:$0xff] %vm969_vm1, %v911_v55  ;;  %v736_v54 = vld [vmem:[%s1569_s6 + $0x130] sm:$0xff]  ;;  %v737_v55 = vld [vmem:[%s1569_s6 + $0x138] sm:$0xff] }
 0x143   : > { %v771_v58 = vpop.permute.xlu1 %770 }
 0x144   : > { %v912_v59 = vmul.f32 %v771_v58, %v702_v56  ;;  %v913_v60 = vmul.f32 %v771_v58, %v703_v57 }
 0x146   : > { %973 = vst [vmem:[%s1576_s9 + $0x20] sm:$0xff] %v912_v59  ;;  %974 = vst.msk [vmem:[%s1576_s9 + $0x28] sm:$0xff] %vm969_vm1, %v913_v60 }
 0x147   : > { %v776_v63 = vpop.permute.xlu1 %775 }
 0x148   : > { %v914_v1 = vmul.f32 %v776_v63, %v704_v61  ;;  %v915_v2 = vmul.f32 %v776_v63, %v705_v62  ;;  %v722_v62 = vld [vmem:[%s1569_s6 + $0xc0] sm:$0xff]  ;;  %v723_v63 = vld [vmem:[%s1569_s6 + $0xc8] sm:$0xff] }
 0x14a   : > { %975 = vst [vmem:[%s1576_s9 + $0x30] sm:$0xff] %v914_v1  ;;  %976 = vst.msk [vmem:[%s1576_s9 + $0x38] sm:$0xff] %vm969_vm1, %v915_v2  ;;  %v740_v1 = vld [vmem:[%s1569_s6 + $0x150] sm:$0xff]  ;;  %v741_v2 = vld [vmem:[%s1569_s6 + $0x158] sm:$0xff] }
 0x14b   : > { %v781_v7 = vpop.permute.xlu1 %780 }
 0x14c   : > { %v916_v8 = vmul.f32 %v781_v7, %v706_v3  ;;  %v917_v9 = vmul.f32 %v781_v7, %v707_v4  ;;  %v806_v10 = vpop.permute.xlu0 %805 }
 0x14d   : > { %v926_v11 = vmul.f32 %v806_v10, %v716_v5  ;;  %v927_v12 = vmul.f32 %v806_v10, %v717_v6  ;;  %v727_v10 = vld [vmem:[%s1569_s6 + $0xe8] sm:$0xff] }
 0x14e   : > { %977 = vst [vmem:[%s1576_s9 + $0x40] sm:$0xff] %v916_v8  ;;  %978 = vst.msk [vmem:[%s1576_s9 + $0x48] sm:$0xff] %vm969_vm1, %v917_v9  ;;  %v726_v9 = vld [vmem:[%s1569_s6 + $0xe0] sm:$0xff] }
 0x14f   : > { %987 = vst [vmem:[%s1576_s9 + $0x90] sm:$0xff] %v926_v11  ;;  %988 = vst.msk [vmem:[%s1576_s9 + $0x98] sm:$0xff] %vm969_vm1, %v927_v12  ;;  %v786_v17 = vpop.permute.xlu1 %785  ;;  %v744_v11 = vld [vmem:[%s1569_s6 + $0x170] sm:$0xff]  ;;  %v745_v12 = vld [vmem:[%s1569_s6 + $0x178] sm:$0xff] }
 0x150   : > { %v918_v18 = vmul.f32 %v786_v17, %v708_v13  ;;  %v919_v19 = vmul.f32 %v786_v17, %v709_v14  ;;  %v816_v20 = vpop.permute.xlu0 %815 }
 0x151   : > { %v930_v21 = vmul.f32 %v816_v20, %v720_v15  ;;  %v931_v22 = vmul.f32 %v816_v20, %v721_v16  ;;  %v731_v20 = vld [vmem:[%s1569_s6 + $0x108] sm:$0xff] }
 0x152   : > { %979 = vst [vmem:[%s1576_s9 + $0x50] sm:$0xff] %v918_v18  ;;  %980 = vst.msk [vmem:[%s1576_s9 + $0x58] sm:$0xff] %vm969_vm1, %v919_v19  ;;  %v730_v19 = vld [vmem:[%s1569_s6 + $0x100] sm:$0xff] }
 0x153   : > { %991 = vst [vmem:[%s1576_s9 + $0xb0] sm:$0xff] %v930_v21  ;;  %992 = vst.msk [vmem:[%s1576_s9 + $0xb8] sm:$0xff] %vm969_vm1, %v931_v22  ;;  %v791_v27 = vpop.permute.xlu1 %790  ;;  %v748_v21 = vld [vmem:[%s1569_s6 + $0x190] sm:$0xff]  ;;  %v749_v22 = vld [vmem:[%s1569_s6 + $0x198] sm:$0xff] }
 0x154   : > { %v920_v28 = vmul.f32 %v791_v27, %v710_v23  ;;  %v921_v0 = vmul.f32 %v791_v27, %v711_v24  ;;  %v826_v29 = vpop.permute.xlu0 %825 }
 0x155   : > { %v934_v30 = vmul.f32 %v826_v29, %v724_v25  ;;  %v935_v31 = vmul.f32 %v826_v29, %v725_v26  ;;  %v735_v29 = vld [vmem:[%s1569_s6 + $0x128] sm:$0xff] }
 0x156   : > { %981 = vst [vmem:[%s1576_s9 + $0x60] sm:$0xff] %v920_v28  ;;  %982 = vst.msk [vmem:[%s1576_s9 + $0x68] sm:$0xff] %vm969_vm1, %v921_v0  ;;  %v734_v0 = vld [vmem:[%s1569_s6 + $0x120] sm:$0xff] }
 0x157   : > { %995 = vst [vmem:[%s1576_s9 + $0xd0] sm:$0xff] %v934_v30  ;;  %996 = vst.msk [vmem:[%s1576_s9 + $0xd8] sm:$0xff] %vm969_vm1, %v935_v31  ;;  %v796_v36 = vpop.permute.xlu1 %795  ;;  %v752_v30 = vld [vmem:[%s1569_s6 + $0x1b0] sm:$0xff]  ;;  %v753_v31 = vld [vmem:[%s1569_s6 + $0x1b8] sm:$0xff] }
 0x158   : > { %v922_v37 = vmul.f32 %v796_v36, %v712_v32  ;;  %v923_v38 = vmul.f32 %v796_v36, %v713_v33  ;;  %v836_v39 = vpop.permute.xlu0 %835 }
 0x159   : > { %v938_v40 = vmul.f32 %v836_v39, %v728_v34  ;;  %v939_v41 = vmul.f32 %v836_v39, %v729_v35  ;;  %v739_v39 = vld [vmem:[%s1569_s6 + $0x148] sm:$0xff] }
 0x15a   : > { %983 = vst [vmem:[%s1576_s9 + $0x70] sm:$0xff] %v922_v37  ;;  %984 = vst.msk [vmem:[%s1576_s9 + $0x78] sm:$0xff] %vm969_vm1, %v923_v38  ;;  %v738_v38 = vld [vmem:[%s1569_s6 + $0x140] sm:$0xff] }
 0x15b   : > { %999 = vst [vmem:[%s1576_s9 + $0xf0] sm:$0xff] %v938_v40  ;;  %1000 = vst.msk [vmem:[%s1576_s9 + $0xf8] sm:$0xff] %vm969_vm1, %v939_v41  ;;  %v801_v46 = vpop.permute.xlu1 %800  ;;  %v756_v40 = vld [vmem:[%s1569_s6 + $0x1d0] sm:$0xff]  ;;  %v757_v41 = vld [vmem:[%s1569_s6 + $0x1d8] sm:$0xff] }
 0x15c   : > { %v924_v47 = vmul.f32 %v801_v46, %v714_v42  ;;  %v925_v48 = vmul.f32 %v801_v46, %v715_v43  ;;  %v846_v49 = vpop.permute.xlu0 %845 }
 0x15d   : > { %v942_v50 = vmul.f32 %v846_v49, %v732_v44  ;;  %v943_v51 = vmul.f32 %v846_v49, %v733_v45  ;;  %v743_v49 = vld [vmem:[%s1569_s6 + $0x168] sm:$0xff] }
 0x15e   : > { %985 = vst [vmem:[%s1576_s9 + $0x80] sm:$0xff] %v924_v47  ;;  %986 = vst.msk [vmem:[%s1576_s9 + $0x88] sm:$0xff] %vm969_vm1, %v925_v48  ;;  %v742_v48 = vld [vmem:[%s1569_s6 + $0x160] sm:$0xff] }
 0x15f   : > { %1003 = vst [vmem:[%s1576_s9 + $0x110] sm:$0xff] %v942_v50  ;;  %1004 = vst.msk [vmem:[%s1576_s9 + $0x118] sm:$0xff] %vm969_vm1, %v943_v51  ;;  %v811_v56 = vpop.permute.xlu1 %810 }
 0x160   : > { %v928_v57 = vmul.f32 %v811_v56, %v718_v52  ;;  %v929_v58 = vmul.f32 %v811_v56, %v719_v53  ;;  %v856_v59 = vpop.permute.xlu0 %855  ;;  %v746_v53 = vld [vmem:[%s1569_s6 + $0x180] sm:$0xff] }
 0x161   : > { %v946_v60 = vmul.f32 %v856_v59, %v736_v54  ;;  %v947_v61 = vmul.f32 %v856_v59, %v737_v55  ;;  %v747_v54 = vld [vmem:[%s1569_s6 + $0x188] sm:$0xff] }
 0x162   : > { %989 = vst [vmem:[%s1576_s9 + $0xa0] sm:$0xff] %v928_v57  ;;  %990 = vst.msk [vmem:[%s1576_s9 + $0xa8] sm:$0xff] %vm969_vm1, %v929_v58  ;;  %v750_v58 = vld [vmem:[%s1569_s6 + $0x1a0] sm:$0xff]  ;;  %v751_v59 = vld [vmem:[%s1569_s6 + $0x1a8] sm:$0xff] }
 0x163   : > { %1007 = vst [vmem:[%s1576_s9 + $0x130] sm:$0xff] %v946_v60  ;;  %1008 = vst.msk [vmem:[%s1576_s9 + $0x138] sm:$0xff] %vm969_vm1, %v947_v61  ;;  %v821_v3 = vpop.permute.xlu1 %820 }
 0x164   : > { %v932_v4 = vmul.f32 %v821_v3, %v722_v62  ;;  %v933_v5 = vmul.f32 %v821_v3, %v723_v63  ;;  %v866_v6 = vpop.permute.xlu0 %865  ;;  %v754_v63 = vld [vmem:[%s1569_s6 + $0x1c0] sm:$0xff] }
 0x165   : > { %v950_v7 = vmul.f32 %v866_v6, %v740_v1  ;;  %v951_v8 = vmul.f32 %v866_v6, %v741_v2  ;;  %v755_v1 = vld [vmem:[%s1569_s6 + $0x1c8] sm:$0xff] }
 0x166   : > { %993 = vst [vmem:[%s1576_s9 + $0xc0] sm:$0xff] %v932_v4  ;;  %994 = vst.msk [vmem:[%s1576_s9 + $0xc8] sm:$0xff] %vm969_vm1, %v933_v5 }
 0x167   : > { %1011 = vst [vmem:[%s1576_s9 + $0x150] sm:$0xff] %v950_v7  ;;  %1012 = vst.msk [vmem:[%s1576_s9 + $0x158] sm:$0xff] %vm969_vm1, %v951_v8  ;;  %v831_v13 = vpop.permute.xlu1 %830 }
 0x168   : > { %v936_v14 = vmul.f32 %v831_v13, %v726_v9  ;;  %v937_v15 = vmul.f32 %v831_v13, %v727_v10  ;;  %v876_v16 = vpop.permute.xlu0 %875 }
 0x169   : > { %v954_v17 = vmul.f32 %v876_v16, %v744_v11  ;;  %v955_v18 = vmul.f32 %v876_v16, %v745_v12 }
 0x16a   : > { %997 = vst [vmem:[%s1576_s9 + $0xe0] sm:$0xff] %v936_v14  ;;  %998 = vst.msk [vmem:[%s1576_s9 + $0xe8] sm:$0xff] %vm969_vm1, %v937_v15 }
 0x16b   : > { %1015 = vst [vmem:[%s1576_s9 + $0x170] sm:$0xff] %v954_v17  ;;  %1016 = vst.msk [vmem:[%s1576_s9 + $0x178] sm:$0xff] %vm969_vm1, %v955_v18  ;;  %v841_v23 = vpop.permute.xlu1 %840 }
 0x16c   : > { %v940_v24 = vmul.f32 %v841_v23, %v730_v19  ;;  %v941_v25 = vmul.f32 %v841_v23, %v731_v20  ;;  %v886_v26 = vpop.permute.xlu0 %885 }
 0x16d   : > { %v958_v27 = vmul.f32 %v886_v26, %v748_v21  ;;  %v959_v28 = vmul.f32 %v886_v26, %v749_v22 }
 0x16e   : > { %1001 = vst [vmem:[%s1576_s9 + $0x100] sm:$0xff] %v940_v24  ;;  %1002 = vst.msk [vmem:[%s1576_s9 + $0x108] sm:$0xff] %vm969_vm1, %v941_v25 }
 0x16f   : > { %1019 = vst [vmem:[%s1576_s9 + $0x190] sm:$0xff] %v958_v27  ;;  %1020 = vst.msk [vmem:[%s1576_s9 + $0x198] sm:$0xff] %vm969_vm1, %v959_v28  ;;  %v851_v32 = vpop.permute.xlu1 %850 }
 0x170   : > { %v944_v33 = vmul.f32 %v851_v32, %v734_v0  ;;  %v945_v34 = vmul.f32 %v851_v32, %v735_v29  ;;  %v896_v35 = vpop.permute.xlu0 %895 }
 0x171   : > { %v962_v36 = vmul.f32 %v896_v35, %v752_v30  ;;  %v963_v37 = vmul.f32 %v896_v35, %v753_v31 }
 0x172   : > { %1005 = vst [vmem:[%s1576_s9 + $0x120] sm:$0xff] %v944_v33  ;;  %1006 = vst.msk [vmem:[%s1576_s9 + $0x128] sm:$0xff] %vm969_vm1, %v945_v34 }
 0x173   : > { %1023 = vst [vmem:[%s1576_s9 + $0x1b0] sm:$0xff] %v962_v36  ;;  %1024 = vst.msk [vmem:[%s1576_s9 + $0x1b8] sm:$0xff] %vm969_vm1, %v963_v37  ;;  %v861_v42 = vpop.permute.xlu1 %860 }
 0x174   : > { %v948_v43 = vmul.f32 %v861_v42, %v738_v38  ;;  %v949_v44 = vmul.f32 %v861_v42, %v739_v39  ;;  %v906_v45 = vpop.permute.xlu0 %905 }
 0x175   : > { %v966_v46 = vmul.f32 %v906_v45, %v756_v40  ;;  %v967_v47 = vmul.f32 %v906_v45, %v757_v41 }
 0x176   : > { %1009 = vst [vmem:[%s1576_s9 + $0x140] sm:$0xff] %v948_v43  ;;  %1010 = vst.msk [vmem:[%s1576_s9 + $0x148] sm:$0xff] %vm969_vm1, %v949_v44 }
 0x177   : > { %1027 = vst [vmem:[%s1576_s9 + $0x1d0] sm:$0xff] %v966_v46  ;;  %1028 = vst.msk [vmem:[%s1576_s9 + $0x1d8] sm:$0xff] %vm969_vm1, %v967_v47  ;;  %v871_v50 = vpop.permute.xlu1 %870 }
 0x178   : > { %v952_v51 = vmul.f32 %v871_v50, %v742_v48  ;;  %v953_v52 = vmul.f32 %v871_v50, %v743_v49 }
 0x17a   : > { %1013 = vst [vmem:[%s1576_s9 + $0x160] sm:$0xff] %v952_v51  ;;  %1014 = vst.msk [vmem:[%s1576_s9 + $0x168] sm:$0xff] %vm969_vm1, %v953_v52 }
 0x17b   : > { %v881_v55 = vpop.permute.xlu1 %880 }
 0x17c   : > { %v956_v56 = vmul.f32 %v881_v55, %v746_v53  ;;  %v957_v57 = vmul.f32 %v881_v55, %v747_v54 }
 0x17e   : > { %1017 = vst [vmem:[%s1576_s9 + $0x180] sm:$0xff] %v956_v56  ;;  %1018 = vst.msk [vmem:[%s1576_s9 + $0x188] sm:$0xff] %vm969_vm1, %v957_v57 }
 0x17f   : > { %v891_v60 = vpop.permute.xlu1 %890 }
 0x180   : > { %v960_v61 = vmul.f32 %v891_v60, %v750_v58  ;;  %v961_v62 = vmul.f32 %v891_v60, %v751_v59 }
 0x182   : > { %1021 = vst [vmem:[%s1576_s9 + $0x1a0] sm:$0xff] %v960_v61  ;;  %1022 = vst.msk [vmem:[%s1576_s9 + $0x1a8] sm:$0xff] %vm969_vm1, %v961_v62 }
 0x183   : > { %v901_v2 = vpop.permute.xlu1 %900 }
 0x184   : > { %v964_v3 = vmul.f32 %v901_v2, %v754_v63  ;;  %v965_v4 = vmul.f32 %v901_v2, %v755_v1 }
 0x186   : > { %1025 = vst [vmem:[%s1576_s9 + $0x1c0] sm:$0xff] %v964_v3  ;;  %1026 = vst.msk [vmem:[%s1576_s9 + $0x1c8] sm:$0xff] %vm969_vm1, %v965_v4 }
 0x187 PF: > { %s14_s17 = sadd.s32 1, %s1377_s17   ;;  %s1740_s15 = smov %s1373_s16 }
 0x188   : > { %p11_p5 = scmp.ge.s32.totalorder %s14_s17, 6   ;;  %s1741_s16 = smov %s1743_s18 }
 0x18a   :  { %13 = sbr.rel (!%p11_p5) target bundleno = 2 (0x2), region = 75 }

</bundles_post_ra>
